<compile_context>
chip_gen: v5e
topology: v5e:2x2
jax: 0.10.0
libtpu: 0.0.40
codegen_flags: <defaults>
</compile_context>

<pallas_src>
import jax
import jax.numpy as jnp
from jax.experimental import pallas as pl
from jax.experimental.pallas import tpu as pltpu

LANE = 128              # fc3 output padded to one lane-dense vreg width
TILE_MAX = 2048         # max rows of x per grid step
MEGACORE_SPLIT_B = 512  # force >= 2 grid steps above this batch size (v7x megacore)


def _round_up(x, m):
    return ((x + m - 1) // m) * m


def student_mlp_kernel(x_ref, w1_ref, b1_ref, w2_ref, b2_ref, w3_ref, b3_ref, o_ref):
    # One (TB, 784) activation tile; the tiny weights stay VMEM-resident across
    # grid steps (constant index_map -> fetched once).  Upcast x in-kernel so
    # the HBM stream can stay in its narrow native dtype; the cast rides the
    # otherwise-idle VPU slot under the DMA.
    x = x_ref[...].astype(jnp.float32)                                       # (TB, 784)
    h1 = jnp.dot(x, w1_ref[...], preferred_element_type=jnp.float32) + b1_ref[...]
    h1 = jnp.maximum(h1, 0.0)                                                # ReLU
    h2 = jnp.dot(h1, w2_ref[...], preferred_element_type=jnp.float32) + b2_ref[...]
    h2 = jnp.maximum(h2, 0.0)                                                # ReLU
    out = jnp.dot(h2, w3_ref[...], preferred_element_type=jnp.float32) + b3_ref[...]
    o_ref[...] = out.astype(o_ref.dtype)                                     # (TB, 128) lane-dense store


def prepare_params(params):
    """One-time prep: transpose nn.Linear weights to (in, out), reshape biases to
    (1, out), and zero-pad the fc3 columns to LANE for lane-dense output stores."""
    w1, b1, w2, b2, w3, b3 = params
    num_class = w3.shape[0]

    w1_t = jnp.asarray(w1, jnp.float32).T                        # (784, 20)
    w2_t = jnp.asarray(w2, jnp.float32).T                        # (20, 20)
    w3_t = jnp.asarray(w3, jnp.float32).T                        # (20, num_class)
    b1_r = jnp.asarray(b1, jnp.float32).reshape(1, -1)           # (1, 20)
    b2_r = jnp.asarray(b2, jnp.float32).reshape(1, -1)           # (1, 20)
    b3_r = jnp.asarray(b3, jnp.float32).reshape(1, -1)           # (1, num_class)

    pad_c = LANE - num_class
    w3_p = jnp.pad(w3_t, ((0, 0), (0, pad_c)))                   # (20, 128), zero cols
    b3_p = jnp.pad(b3_r, ((0, 0), (0, pad_c)))                   # (1, 128),  zero cols

    return {
        "w1": w1_t, "b1": b1_r,
        "w2": w2_t, "b2": b2_r,
        "w3": w3_p, "b3": b3_p,
        "num_class": num_class,
    }


def student_model_forward(x, prepped, *, tile_max=TILE_MAX, out_dtype=jnp.bfloat16):
    """x: (B, 1, 28, 28) in its native dtype (f32 / bf16 / u8).
    Returns logits (B, num_class) in `out_dtype`."""
    num_class = prepped["num_class"]
    w1, b1 = prepped["w1"], prepped["b1"]
    w2, b2 = prepped["w2"], prepped["b2"]
    w3, b3 = prepped["w3"], prepped["b3"]

    x_flat = x.reshape(-1, 784)                   # == x.view(-1, 784); NO dtype upcast here
    B = x_flat.shape[0]

    # --- tile selection: minimize pad waste, keep the v7x megacore busy ------
    num_tiles = pl.cdiv(B, tile_max)
    if B >= MEGACORE_SPLIT_B:
        num_tiles = max(num_tiles, 2)             # give both TensorCores work
        num_tiles += num_tiles % 2                # even grid -> balanced split
    tb = max(8, _round_up(pl.cdiv(B, num_tiles), 8))
    b_pad = num_tiles * tb
    if b_pad != B:
        x_flat = jnp.pad(x_flat, ((0, b_pad - B), (0, 0)))
    grid = (num_tiles,)

    # --- explicit VMEM budget so big tiles also compile on v5e (16 MiB default)
    x_bytes = x_flat.dtype.itemsize
    o_bytes = jnp.dtype(out_dtype).itemsize
    vmem_budget = (
        2 * tb * 784 * x_bytes         # double-buffered x tiles
        + 2 * tb * LANE * o_bytes      # double-buffered output tiles
        + 4 * tb * LANE * 4            # f32 intermediates (lane-padded h1/h2)
        + (2 << 20)                    # resident (double-buffered) weights + slack
    )
    vmem_limit = int(min(max(vmem_budget, 32 << 20), 56 << 20))

    flops = 2 * b_pad * (784 * 20 + 20 * 20 + 20 * LANE)
    bytes_accessed = int(
        x_flat.size * x_bytes
        + sum(a.size * a.dtype.itemsize for a in (w1, b1, w2, b2, w3, b3))
        + b_pad * LANE * o_bytes
    )

    out = pl.pallas_call(
        student_mlp_kernel,
        out_shape=jax.ShapeDtypeStruct((b_pad, LANE), out_dtype),
        grid=grid,
        in_specs=[
            pl.BlockSpec((tb, 784), lambda i: (i, 0)),           # x: streamed per tile
            pl.BlockSpec((784, 20), lambda i: (0, 0)),           # w1: same block every step
            pl.BlockSpec((1, 20), lambda i: (0, 0)),             # b1
            pl.BlockSpec((20, 20), lambda i: (0, 0)),            # w2
            pl.BlockSpec((1, 20), lambda i: (0, 0)),             # b2
            pl.BlockSpec((20, LANE), lambda i: (0, 0)),          # w3 (zero-padded cols)
            pl.BlockSpec((1, LANE), lambda i: (0, 0)),           # b3 (zero-padded cols)
        ],
        out_specs=pl.BlockSpec((tb, LANE), lambda i: (i, 0)),
        compiler_params=pltpu.CompilerParams(
            dimension_semantics=("parallel",),                   # megacore sharding on v7x
            vmem_limit_bytes=vmem_limit,
        ),
        cost_estimate=pl.CostEstimate(
            flops=flops, transcendentals=0, bytes_accessed=bytes_accessed
        ),
    )(x_flat, w1, b1, w2, b2, w3, b3)

    return out[:B, :num_class]


def init_params(key, num_class=10):
    """Deterministic init mimicking nn.Linear shapes: W is (out, in), b is (out,)."""
    k1, k2, k3, k4, k5, k6 = jax.random.split(key, 6)

    def linear_init(kw, kb, fan_in, fan_out):
        bound = 1.0 / jnp.sqrt(fan_in)
        w = jax.random.uniform(kw, (fan_out, fan_in), jnp.float32, -bound, bound)
        b = jax.random.uniform(kb, (fan_out,), jnp.float32, -bound, bound)
        return w, b

    w1, b1 = linear_init(k1, k2, 784, 20)
    w2, b2 = linear_init(k3, k4, 20, 20)
    w3, b3 = linear_init(k5, k6, 20, num_class)
    return (w1, b1, w2, b2, w3, b3)


def reference_forward(x, params):
    """Plain-JAX reference matching the PyTorch forward."""
    w1, b1, w2, b2, w3, b3 = params
    h = x.reshape(-1, 784).astype(jnp.float32)
    h = jnp.maximum(h @ w1.T + b1, 0.0)
    h = jnp.maximum(h @ w2.T + b2, 0.0)
    return h @ w3.T + b3


if __name__ == "__main__":
    key = jax.random.PRNGKey(0)
    k_x, k_p = jax.random.split(key)

    params = init_params(k_p, num_class=10)
    prepped = prepare_params(params)                                # one-time weight prep

    # --- small-batch check (f32 in / f32 out, tight tolerance) ---------------
    B = 2
    x = jax.random.normal(k_x, (B, 1, 28, 28), dtype=jnp.float32)   # NCHW, like MNIST
    out = jax.block_until_ready(
        student_model_forward(x, prepped, out_dtype=jnp.float32))
    ref = reference_forward(x, params)
    assert out.shape == (B, 10), out.shape
    assert jnp.allclose(out, ref, atol=1e-4, rtol=1e-4), "f32 mismatch vs reference"

    # --- default fast path: bf16 input stream + bf16 logits ------------------
    out_fast = jax.block_until_ready(
        student_model_forward(x.astype(jnp.bfloat16), prepped))
    assert out_fast.shape == (B, 10), out_fast.shape
    assert out_fast.dtype == jnp.bfloat16
    assert jnp.allclose(out_fast.astype(jnp.float32), ref, atol=5e-2, rtol=5e-2), \
        "bf16 path mismatch vs reference"

    # --- mid-size batch: exercises multi-step grid + pad/slice logic ---------
    B2 = 520
    x2 = jax.random.normal(jax.random.PRNGKey(1), (B2, 1, 28, 28), dtype=jnp.float32)
    out2 = jax.block_until_ready(
        student_model_forward(x2, prepped, out_dtype=jnp.float32))
    ref2 = reference_forward(x2, params)
    assert out2.shape == (B2, 10), out2.shape
    assert jnp.allclose(out2, ref2, atol=1e-3, rtol=1e-3), "multi-tile mismatch vs reference"

    print("KERNEL_OK")
</pallas_src>

<mosaic_0001>
module attributes {stable_mosaic.version = 11 : i64} {
  func.func @student_mlp_kernel(%arg0: i32, %arg1: memref<8x784xf32, #tpu.memory_space<vmem>>, %arg2: memref<784x20xf32, #tpu.memory_space<vmem>>, %arg3: memref<1x20xf32, #tpu.memory_space<vmem>>, %arg4: memref<20x20xf32, #tpu.memory_space<vmem>>, %arg5: memref<1x20xf32, #tpu.memory_space<vmem>>, %arg6: memref<20x128xf32, #tpu.memory_space<vmem>>, %arg7: memref<1x128xf32, #tpu.memory_space<vmem>>, %arg8: memref<8x128xf32, #tpu.memory_space<vmem>>) attributes {dimension_semantics = [#tpu.dimension_semantics<parallel>], iteration_bounds = array<i64: 1>, scalar_prefetch = 0 : i64, scratch_operands = 0 : i64, tpu.core_type = #tpu.core_type<tc>, window_params = [{transform_indices = @transform_0, window_bounds = array<i64: 8, 784>}, {pipeline_mode = #tpu.pipeline_mode<synchronous>, transform_indices = @transform_1, window_bounds = array<i64: 784, 20>}, {pipeline_mode = #tpu.pipeline_mode<synchronous>, transform_indices = @transform_2, window_bounds = array<i64: 1, 20>}, {pipeline_mode = #tpu.pipeline_mode<synchronous>, transform_indices = @transform_3, window_bounds = array<i64: 20, 20>}, {pipeline_mode = #tpu.pipeline_mode<synchronous>, transform_indices = @transform_4, window_bounds = array<i64: 1, 20>}, {pipeline_mode = #tpu.pipeline_mode<synchronous>, transform_indices = @transform_5, window_bounds = array<i64: 20, 128>}, {pipeline_mode = #tpu.pipeline_mode<synchronous>, transform_indices = @transform_6, window_bounds = array<i64: 1, 128>}, {transform_indices = @transform_7, window_bounds = array<i64: 8, 128>}]} {
    %c0 = arith.constant 0 : index
    %c0_0 = arith.constant 0 : index
    %0 = vector.load %arg1[%c0, %c0_0] : memref<8x784xf32, #tpu.memory_space<vmem>>, vector<8x784xf32>
    %c0_1 = arith.constant 0 : index
    %c0_2 = arith.constant 0 : index
    %1 = vector.load %arg2[%c0_1, %c0_2] : memref<784x20xf32, #tpu.memory_space<vmem>>, vector<784x20xf32>
    %cst = arith.constant dense<0.000000e+00> : vector<8x20xf32>
    %2 = tpu.matmul %0, %1, %cst {dimension_numbers = #tpu.dot_dimension_numbers<[1], [0], [0], [1], [0, 0, 1, 1], [], []>} : vector<8x784xf32>, vector<784x20xf32>, vector<8x20xf32> -> vector<8x20xf32>
    %c0_3 = arith.constant 0 : index
    %c0_4 = arith.constant 0 : index
    %3 = vector.load %arg3[%c0_3, %c0_4] : memref<1x20xf32, #tpu.memory_space<vmem>>, vector<1x20xf32>
    %4 = vector.broadcast %3 : vector<1x20xf32> to vector<8x20xf32>
    %5 = arith.addf %2, %4 : vector<8x20xf32>
    %cst_5 = arith.constant 0.000000e+00 : f32
    %6 = vector.broadcast %cst_5 : f32 to vector<8x20xf32>
    %7 = arith.maximumf %5, %6 : vector<8x20xf32>
    %c0_6 = arith.constant 0 : index
    %c0_7 = arith.constant 0 : index
    %8 = vector.load %arg4[%c0_6, %c0_7] : memref<20x20xf32, #tpu.memory_space<vmem>>, vector<20x20xf32>
    %cst_8 = arith.constant dense<0.000000e+00> : vector<8x20xf32>
    %9 = tpu.matmul %7, %8, %cst_8 {dimension_numbers = #tpu.dot_dimension_numbers<[1], [0], [0], [1], [0, 0, 1, 1], [], []>} : vector<8x20xf32>, vector<20x20xf32>, vector<8x20xf32> -> vector<8x20xf32>
    %c0_9 = arith.constant 0 : index
    %c0_10 = arith.constant 0 : index
    %10 = vector.load %arg5[%c0_9, %c0_10] : memref<1x20xf32, #tpu.memory_space<vmem>>, vector<1x20xf32>
    %11 = vector.broadcast %10 : vector<1x20xf32> to vector<8x20xf32>
    %12 = arith.addf %9, %11 : vector<8x20xf32>
    %cst_11 = arith.constant 0.000000e+00 : f32
    %13 = vector.broadcast %cst_11 : f32 to vector<8x20xf32>
    %14 = arith.maximumf %12, %13 : vector<8x20xf32>
    %c0_12 = arith.constant 0 : index
    %c0_13 = arith.constant 0 : index
    %15 = vector.load %arg6[%c0_12, %c0_13] : memref<20x128xf32, #tpu.memory_space<vmem>>, vector<20x128xf32>
    %cst_14 = arith.constant dense<0.000000e+00> : vector<8x128xf32>
    %16 = tpu.matmul %14, %15, %cst_14 {dimension_numbers = #tpu.dot_dimension_numbers<[1], [0], [0], [1], [0, 0, 1, 1], [], []>} : vector<8x20xf32>, vector<20x128xf32>, vector<8x128xf32> -> vector<8x128xf32>
    %c0_15 = arith.constant 0 : index
    %c0_16 = arith.constant 0 : index
    %17 = vector.load %arg7[%c0_15, %c0_16] : memref<1x128xf32, #tpu.memory_space<vmem>>, vector<1x128xf32>
    %18 = vector.broadcast %17 : vector<1x128xf32> to vector<8x128xf32>
    %19 = arith.addf %16, %18 : vector<8x128xf32>
    %c0_17 = arith.constant 0 : index
    %c0_18 = arith.constant 0 : index
    %20 = vector.load %arg8[%c0_17, %c0_18] : memref<8x128xf32, #tpu.memory_space<vmem>>, vector<8x128xf32>
    tpu.vector_store %arg8[%c0_17, %c0_18], %19 {strides = array<i32>} : memref<8x128xf32, #tpu.memory_space<vmem>>, vector<8x128xf32>,
    return
  }
  func.func @transform_0(%arg0: i32) -> (i32, i32) {
    %c0_i32 = arith.constant 0 : i32
    %c0_i32_0 = arith.constant 0 : i32
    return %arg0, %c0_i32 : i32, i32
  }
  func.func @transform_1(%arg0: i32) -> (i32, i32) {
    %c0_i32 = arith.constant 0 : i32
    %c0_i32_0 = arith.constant 0 : i32
    %c0_i32_1 = arith.constant 0 : i32
    return %c0_i32, %c0_i32_0 : i32, i32
  }
  func.func @transform_2(%arg0: i32) -> (i32, i32) {
    %c0_i32 = arith.constant 0 : i32
    %c0_i32_0 = arith.constant 0 : i32
    %c0_i32_1 = arith.constant 0 : i32
    return %c0_i32, %c0_i32_0 : i32, i32
  }
  func.func @transform_3(%arg0: i32) -> (i32, i32) {
    %c0_i32 = arith.constant 0 : i32
    %c0_i32_0 = arith.constant 0 : i32
    %c0_i32_1 = arith.constant 0 : i32
    return %c0_i32, %c0_i32_0 : i32, i32
  }
  func.func @transform_4(%arg0: i32) -> (i32, i32) {
    %c0_i32 = arith.constant 0 : i32
    %c0_i32_0 = arith.constant 0 : i32
    %c0_i32_1 = arith.constant 0 : i32
    return %c0_i32, %c0_i32_0 : i32, i32
  }
  func.func @transform_5(%arg0: i32) -> (i32, i32) {
    %c0_i32 = arith.constant 0 : i32
    %c0_i32_0 = arith.constant 0 : i32
    %c0_i32_1 = arith.constant 0 : i32
    return %c0_i32, %c0_i32_0 : i32, i32
  }
  func.func @transform_6(%arg0: i32) -> (i32, i32) {
    %c0_i32 = arith.constant 0 : i32
    %c0_i32_0 = arith.constant 0 : i32
    %c0_i32_1 = arith.constant 0 : i32
    return %c0_i32, %c0_i32_0 : i32, i32
  }
  func.func @transform_7(%arg0: i32) -> (i32, i32) {
    %c0_i32 = arith.constant 0 : i32
    %c0_i32_0 = arith.constant 0 : i32
    return %arg0, %c0_i32 : i32, i32
  }
}

</mosaic_0001>

<bundles_post_ra>
// kernel: tpu_custom_call.1
= control target key start
LH: loop header
LB: loop body
LE: loop exit
PB: predicated region body
PF: predicated region fallthrough
CT: control target
= control target key end

     0   :  { %s788_s0 = inlined_call_operand.vmem [shape: f32[8,784], index: 0, kind: input, shape index: {}]   ;;  %s789_s1 = inlined_call_operand.vmem [shape: f32[784,20], index: 1, kind: input, shape index: {}]   ;;  %s790_s2 = inlined_call_operand.vmem [shape: f32[1,20], index: 2, kind: input, shape index: {}]   ;;  %s791_s3 = inlined_call_operand.vmem [shape: f32[20,20], index: 3, kind: input, shape index: {}]   ;;  %s792_s4 = inlined_call_operand.vmem [shape: f32[1,20], index: 4, kind: input, shape index: {}]   ;;  %s793_s5 = inlined_call_operand.vmem [shape: f32[20,128], index: 5, kind: input, shape index: {}]   ;;  %s794_s6 = inlined_call_operand.vmem [shape: f32[1,128], index: 6, kind: input, shape index: {}]   ;;  %s795_s7 = inlined_call_operand.hbm [shape: f32[8,128], index: 7, kind: output, shape index: {}]  }
   0x1   :  { %v49_v0 = vld [vmem:[%s789_s1 + $0x78] sm:$0xff]  ;;  %v48_v1 = vld [vmem:[%s789_s1 + $0x70] sm:$0xff]  ;;  %v47_v4 = vld [vmem:[%s789_s1 + $0x68] sm:$0xff] }
   0x2   :  { %v65_v2 = vld [vmem:[%s789_s1 + $0xf8] sm:$0xff]  ;;  %140 = vmatpush.msra.mxu0 %v49_v0  ;;  %v64_v3 = vld [vmem:[%s789_s1 + $0xf0] sm:$0xff]  ;;  %v63_v5 = vld [vmem:[%s789_s1 + $0xe8] sm:$0xff] }
   0x3   :  { %160 = vmatpush.msra.mxu1 %v65_v2  ;;  %v46_v6 = vld [vmem:[%s789_s1 + $0x60] sm:$0xff]  ;;  %v45_v8 = vld [vmem:[%s789_s1 + $0x58] sm:$0xff]  ;;  %v44_v10 = vld [vmem:[%s789_s1 + $0x50] sm:$0xff] }
   0x4   :  { %141 = vmatpush.msra.mxu0 %v48_v1  ;;  %v62_v7 = vld [vmem:[%s789_s1 + $0xe0] sm:$0xff]  ;;  %v61_v9 = vld [vmem:[%s789_s1 + $0xd8] sm:$0xff]  ;;  %v60_v12 = vld [vmem:[%s789_s1 + $0xd0] sm:$0xff] }
   0x5   :  { %161 = vmatpush.msra.mxu1 %v64_v3  ;;  %v81_v11 = vld [vmem:[%s789_s1 + $0x178] sm:$0xff]  ;;  %v80_v13 = vld [vmem:[%s789_s1 + $0x170] sm:$0xff]  ;;  %v79_v15 = vld [vmem:[%s789_s1 + $0x168] sm:$0xff] }
   0x6   :  { %142 = vmatpush.msra.mxu0 %v47_v4  ;;  %180 = vmatpush.msra.mxu2 %v81_v11  ;;  %v97_v14 = vld [vmem:[%s789_s1 + $0x1f8] sm:$0xff]  ;;  %v96_v16 = vld [vmem:[%s789_s1 + $0x1f0] sm:$0xff]  ;;  %v43_v17 = vld [vmem:[%s789_s1 + $0x48] sm:$0xff] }
   0x7   :  { %162 = vmatpush.msra.mxu1 %v63_v5  ;;  %v59_v18 = vld [vmem:[%s789_s1 + $0xc8] sm:$0xff]  ;;  %200 = vmatpush.msra.mxu3 %v97_v14  ;;  %v78_v19 = vld [vmem:[%s789_s1 + $0x160] sm:$0xff]  ;;  %v77_v23 = vld [vmem:[%s789_s1 + $0x158] sm:$0xff] }
   0x8   :  { %143 = vmatpush.msra.mxu0 %v46_v6  ;;  %181 = vmatpush.msra.mxu2 %v80_v13  ;;  %v95_v20 = vld [vmem:[%s789_s1 + $0x1e8] sm:$0xff]  ;;  %v42_v21 = vld [vmem:[%s789_s1 + $0x40] sm:$0xff]  ;;  %v41_v25 = vld [vmem:[%s789_s1 + $0x38] sm:$0xff] }
   0x9   :  { %163 = vmatpush.msra.mxu1 %v62_v7  ;;  %v58_v22 = vld [vmem:[%s789_s1 + $0xc0] sm:$0xff]  ;;  %201 = vmatpush.msra.mxu3 %v96_v16  ;;  %v57_v26 = vld [vmem:[%s789_s1 + $0xb8] sm:$0xff]  ;;  %v76_v27 = vld [vmem:[%s789_s1 + $0x150] sm:$0xff] }
   0xa   :  { %144 = vmatpush.msra.mxu0 %v45_v8  ;;  %182 = vmatpush.msra.mxu2 %v79_v15  ;;  %v94_v24 = vld [vmem:[%s789_s1 + $0x1e0] sm:$0xff]  ;;  %v93_v28 = vld [vmem:[%s789_s1 + $0x1d8] sm:$0xff]  ;;  %v40_v29 = vld [vmem:[%s789_s1 + $0x30] sm:$0xff] }
   0xb   :  { %164 = vmatpush.msra.mxu1 %v61_v9  ;;  %202 = vmatpush.msra.mxu3 %v95_v20  ;;  %v56_v30 = vld [vmem:[%s789_s1 + $0xb0] sm:$0xff]  ;;  %v75_v31 = vld [vmem:[%s789_s1 + $0x148] sm:$0xff]  ;;  %v74_v35 = vld [vmem:[%s789_s1 + $0x140] sm:$0xff] }
   0xc   :  { %145 = vmatpush.msra.mxu0 %v44_v10  ;;  %183 = vmatpush.msra.mxu2 %v78_v19  ;;  %v92_v32 = vld [vmem:[%s789_s1 + $0x1d0] sm:$0xff]  ;;  %v39_v33 = vld [vmem:[%s789_s1 + $0x28] sm:$0xff]  ;;  %v38_v37 = vld [vmem:[%s789_s1 + $0x20] sm:$0xff] }
   0xd   :  { %165 = vmatpush.msra.mxu1 %v60_v12  ;;  %203 = vmatpush.msra.mxu3 %v94_v24  ;;  %v55_v34 = vld [vmem:[%s789_s1 + $0xa8] sm:$0xff]  ;;  %v54_v38 = vld [vmem:[%s789_s1 + $0xa0] sm:$0xff]  ;;  %v73_v39 = vld [vmem:[%s789_s1 + $0x138] sm:$0xff] }
   0xe   :  { %146 = vmatpush.msra.mxu0 %v43_v17  ;;  %184 = vmatpush.msra.mxu2 %v77_v23  ;;  %v91_v36 = vld [vmem:[%s789_s1 + $0x1c8] sm:$0xff]  ;;  %v90_v40 = vld [vmem:[%s789_s1 + $0x1c0] sm:$0xff]  ;;  %v37_v41 = vld [vmem:[%s789_s1 + $0x18] sm:$0xff] }
   0xf   :  { %166 = vmatpush.msra.mxu1 %v59_v18  ;;  %204 = vmatpush.msra.mxu3 %v93_v28  ;;  %v53_v42 = vld [vmem:[%s789_s1 + $0x98] sm:$0xff]  ;;  %v72_v43 = vld [vmem:[%s789_s1 + $0x130] sm:$0xff]  ;;  %v71_v47 = vld [vmem:[%s789_s1 + $0x128] sm:$0xff] }
  0x10   :  { %147 = vmatpush.msra.mxu0 %v42_v21  ;;  %185 = vmatpush.msra.mxu2 %v76_v27  ;;  %v89_v44 = vld [vmem:[%s789_s1 + $0x1b8] sm:$0xff]  ;;  %v36_v45 = vld [vmem:[%s789_s1 + $0x10] sm:$0xff]  ;;  %v35_v49 = vld [vmem:[%s789_s1 + $0x8] sm:$0xff] }
  0x11   :  { %167 = vmatpush.msra.mxu1 %v58_v22  ;;  %205 = vmatpush.msra.mxu3 %v92_v32  ;;  %v52_v46 = vld [vmem:[%s789_s1 + $0x90] sm:$0xff]  ;;  %v51_v50 = vld [vmem:[%s789_s1 + $0x88] sm:$0xff]  ;;  %v70_v51 = vld [vmem:[%s789_s1 + $0x120] sm:$0xff] }
  0x12   :  { %148 = vmatpush.msra.mxu0 %v41_v25  ;;  %186 = vmatpush.msra.mxu2 %v75_v31  ;;  %v88_v48 = vld [vmem:[%s789_s1 + $0x1b0] sm:$0xff]  ;;  %v87_v52 = vld [vmem:[%s789_s1 + $0x1a8] sm:$0xff]  ;;  %v34_v53 = vld [vmem:[%s789_s1] sm:$0xff] }
  0x13   :  { %168 = vmatpush.msra.mxu1 %v57_v26  ;;  %206 = vmatpush.msra.mxu3 %v91_v36  ;;  %v50_v54 = vld [vmem:[%s789_s1 + $0x80] sm:$0xff]  ;;  %v113_v55 = vld [vmem:[%s789_s1 + $0x278] sm:$0xff]  ;;  %v112_v59 = vld [vmem:[%s789_s1 + $0x270] sm:$0xff] }
  0x14   :  { %149 = vmatpush.msra.mxu0 %v40_v29  ;;  %187 = vmatpush.msra.mxu2 %v74_v35  ;;  %v129_v56 = vld [vmem:[%s789_s1 + $0x2f8] sm:$0xff]  ;;  %v86_v58 = vld [vmem:[%s789_s1 + $0x1a0] sm:$0xff]  ;;  %v128_v60 = vld [vmem:[%s789_s1 + $0x2f0] sm:$0xff] }
  0x15   :  { %169 = vmatpush.msra.mxu1 %v56_v30  ;;  %207 = vmatpush.msra.mxu3 %v90_v40  ;;  %v69_v57 = vld [vmem:[%s789_s1 + $0x118] sm:$0xff]  ;;  %v68_v61 = vld [vmem:[%s789_s1 + $0x110] sm:$0xff]  ;;  %v111_v63 = vld [vmem:[%s789_s1 + $0x268] sm:$0xff] }
  0x16   :  { %150 = vmatpush.msra.mxu0 %v39_v33  ;;  %188 = vmatpush.msra.mxu2 %v73_v39  ;;  %v85_v62 = vld [vmem:[%s789_s1 + $0x198] sm:$0xff]  ;;  %v110_v0 = vld [vmem:[%s789_s1 + $0x260] sm:$0xff]  ;;  %v127_v1 = vld [vmem:[%s789_s1 + $0x2e8] sm:$0xff] }
  0x17   :  { %170 = vmatpush.msra.mxu1 %v55_v34  ;;  %208 = vmatpush.msra.mxu3 %v89_v44  ;;  %v126_v2 = vld [vmem:[%s789_s1 + $0x2e0] sm:$0xff]  ;;  %v67_v3 = vld [vmem:[%s789_s1 + $0x108] sm:$0xff]  ;;  %v84_v4 = vld [vmem:[%s789_s1 + $0x190] sm:$0xff] }
  0x18   :  { %151 = vmatpush.msra.mxu0 %v38_v37  ;;  %189 = vmatpush.msra.mxu2 %v72_v43  ;;  %v66_v5 = vld [vmem:[%s789_s1 + $0x100] sm:$0xff]  ;;  %v83_v6 = vld [vmem:[%s789_s1 + $0x188] sm:$0xff] }
  0x19   :  { %171 = vmatpush.msra.mxu1 %v54_v38  ;;  %209 = vmatpush.msra.mxu3 %v88_v48 }
  0x1a   :  { %152 = vmatpush.msra.mxu0 %v37_v41  ;;  %190 = vmatpush.msra.mxu2 %v71_v47 }
  0x1b   :  { %172 = vmatpush.msra.mxu1 %v53_v42  ;;  %210 = vmatpush.msra.mxu3 %v87_v52 }
  0x1c   :  { %153 = vmatpush.msra.mxu0 %v36_v45  ;;  %191 = vmatpush.msra.mxu2 %v70_v51 }
  0x1d   :  { %173 = vmatpush.msra.mxu1 %v52_v46  ;;  %211 = vmatpush.msra.mxu3 %v86_v58 }
  0x1e   :  { %154 = vmatpush.msra.mxu0 %v35_v49  ;;  %192 = vmatpush.msra.mxu2 %v69_v57 }
  0x1f   :  { %174 = vmatpush.msra.mxu1 %v51_v50  ;;  %212 = vmatpush.msra.mxu3 %v85_v62 }
  0x20   :  { %155 = vmatpush.msra.mxu0 %v34_v53  ;;  %193 = vmatpush.msra.mxu2 %v68_v61 }
  0x21   :  { %175 = vmatpush.msra.mxu1 %v50_v54 }
  0x22   :  { %220 = vmatpush.msrb.mxu0 %v113_v55 }
  0x23   :  { %240 = vmatpush.msrb.mxu1 %v129_v56 }
  0x24   :  { %221 = vmatpush.msrb.mxu0 %v112_v59 }
  0x25   :  { %241 = vmatpush.msrb.mxu1 %v128_v60 }
  0x26   :  { %222 = vmatpush.msrb.mxu0 %v111_v63 }
  0x27   :  { %242 = vmatpush.msrb.mxu1 %v127_v1 }
  0x28   :  { %12 = vsyncpa [#allocation3], 0  ;;  %v109_v7 = vld [vmem:[%s789_s1 + $0x258] sm:$0xff]  ;;  %194 = vmatpush.msra.mxu2 %v67_v3  ;;  %213 = vmatpush.msra.mxu3 %v84_v4  ;;  %v29_v9 = vld [vmem:[%s788_s0 + $0x10] sm:$0xff]  ;;  %vm136_vm0 = vcmask 130048   ;;  %vm292_vm1 = vcmask 1043456  }
  0x29   :  { %v125_v8 = vld [vmem:[%s789_s1 + $0x2d8] sm:$0xff]  ;;  %223 = vmatpush.msrb.mxu0 %v110_v0  ;;  %243 = vmatpush.msrb.mxu1 %v126_v2  ;;  %v82_v10 = vld [vmem:[%s789_s1 + $0x180] sm:$0xff]  ;;  %v108_v11 = vld [vmem:[%s789_s1 + $0x250] sm:$0xff]  ;;  %vm288_vm2 = vcmask 162816   ;;  %s402_s18 = smov [#allocation2]   ;;  %s358_s22 = sshll.u32 %s795_s7, 4  ;;  %s359_s22 = int_to_ptr.hbm [resolvable:$true] %s358_s22 }
  0x2a   :  { %v124_v12 = vld [vmem:[%s789_s1 + $0x2d0] sm:$0xff]  ;;  %195 = vmatpush.msra.mxu2 %v66_v5  ;;  %214 = vmatpush.msra.mxu3 %v83_v6  ;;  %v131_v13 = vld [vmem:[%s789_s1 + $0x308] sm:$0xff]  ;;  %v27_v14 = vld [vmem:[%s788_s0] sm:$0xff]  ;;  %s356_s19 = sshll.u32 %s402_s18, 4  ;;  %s357_s19 = int_to_ptr.vmem [resolvable:$true] %s356_s19 }
  0x2b   :  { %224 = vmatpush.msrb.mxu0 %v109_v7  ;;  %244 = vmatpush.msrb.mxu1 %v125_v8  ;;  %v107_v15 = vld [vmem:[%s789_s1 + $0x248] sm:$0xff]  ;;  %v30_v17 = vld [vmem:[%s788_s0 + $0x18] sm:$0xff]  ;;  %v106_v19 = vld [vmem:[%s789_s1 + $0x240] sm:$0xff] }
  0x2c   :  { %v123_v16 = vld [vmem:[%s789_s1 + $0x2c8] sm:$0xff]  ;;  %196 = vmatmul.f32.vlgmr.msra.gmra.mxu2 %v29_v9  ;;  %215 = vmatpush.msra.mxu3 %v82_v10  ;;  %v122_v20 = vld [vmem:[%s789_s1 + $0x2c0] sm:$0xff]  ;;  %v105_v22 = vld [vmem:[%s789_s1 + $0x238] sm:$0xff] }
  0x2d   :  { %225 = vmatpush.msrb.mxu0 %v108_v11  ;;  %245 = vmatpush.msrb.mxu1 %v124_v12  ;;  %v28_v18 = vld [vmem:[%s788_s0 + $0x8] sm:$0xff]  ;;  %v130_v21 = vld [vmem:[%s789_s1 + $0x300] sm:$0xff]  ;;  %v121_v23 = vld [vmem:[%s789_s1 + $0x2b8] sm:$0xff] }
  0x2e   :  { %274 = vmatpush.msrb.mxu2 %v131_v13  ;;  %156 = vmatmul.f32.vlgmr.msra.gmra.mxu0 %v27_v14  ;;  %v33_v24 = vld [vmem:[%s788_s0 + $0x30] sm:$0xff]  ;;  %v103_v27 = vld [vmem:[%s789_s1 + $0x228] sm:$0xff]  ;;  %v102_v29 = vld [vmem:[%s789_s1 + $0x220] sm:$0xff] }
  0x2f   :  { %226 = vmatpush.msrb.mxu0 %v107_v15  ;;  %246 = vmatpush.msrb.mxu1 %v123_v16  ;;  %v104_v25 = vld [vmem:[%s789_s1 + $0x230] sm:$0xff]  ;;  %v119_v28 = vld [vmem:[%s789_s1 + $0x2a8] sm:$0xff]  ;;  %v118_v30 = vld [vmem:[%s789_s1 + $0x2a0] sm:$0xff] }
  0x30   :  { %216 = vmatmul.f32.vlgmr.msra.gmra.mxu3 %v30_v17  ;;  %176 = vmatmul.f32.vlgmr.msra.gmra.mxu1 %v28_v18  ;;  %v120_v26 = vld [vmem:[%s789_s1 + $0x2b0] sm:$0xff]  ;;  %v101_v31 = vld [vmem:[%s789_s1 + $0x218] sm:$0xff]  ;;  %v99_v35 = vld [vmem:[%s789_s1 + $0x208] sm:$0xff] }
  0x31   :  { %227 = vmatpush.msrb.mxu0 %v106_v19  ;;  %247 = vmatpush.msrb.mxu1 %v122_v20  ;;  %v117_v32 = vld [vmem:[%s789_s1 + $0x298] sm:$0xff]  ;;  %v100_v33 = vld [vmem:[%s789_s1 + $0x210] sm:$0xff]  ;;  %v115_v36 = vld [vmem:[%s789_s1 + $0x288] sm:$0xff] }
  0x32   :  { %275 = vmatpush.msrb.mxu2 %v130_v21  ;;  %v116_v34 = vld [vmem:[%s789_s1 + $0x290] sm:$0xff]  ;;  %v98_v37 = vld [vmem:[%s789_s1 + $0x200] sm:$0xff]  ;;  %v32_v40 = vld [vmem:[%s788_s0 + $0x28] sm:$0xff] }
  0x33   :  { %228 = vmatpush.msrb.mxu0 %v105_v22  ;;  %248 = vmatpush.msrb.mxu1 %v121_v23  ;;  %v114_v38 = vld [vmem:[%s789_s1 + $0x280] sm:$0xff]  ;;  %v283_v41 = vld [vmem:[%s791_s3 + $0x10] sm:$0xf]  ;;  %v282_v42 = vld [vmem:[%s791_s3 + $0x8] sm:$0xff] }
  0x34   :  { %367 = vmatmul.msk.f32.vlgmr.msrb.gmra.mxu2 %vm136_vm0, %v33_v24  ;;  %v31_v39 = vld [vmem:[%s788_s0 + $0x20] sm:$0xff]  ;;  %368 = vmatpush.msk.msrb.mxu3 %vm292_vm1, %v283_v41  ;;  %v319_v44 = vld [vmem:[%s793_s5 + $0x10] sm:$0xf]  ;;  %v318_v61 = vld [vmem:[%s793_s5 + $0x8] sm:$0xff] }
  0x35   :  { %229 = vmatpush.msrb.mxu0 %v104_v25  ;;  %249 = vmatpush.msrb.mxu1 %v120_v26  ;;  %v281_v43 = vld [vmem:[%s791_s3] sm:$0xff] }
  0x36   :  { %310 = vmatpush.msrb.mxu3 %v282_v42  ;;  %370 = vmatpush.msk.msra.mxu2 %vm292_vm1, %v319_v44  ;;  %v373_v45 = vld [vmem:[%s790_s2] ss:$0 sm:$0xff] }
  0x37   :  { %230 = vmatpush.msrb.mxu0 %v103_v27  ;;  %250 = vmatpush.msrb.mxu1 %v119_v28  ;;  %v317_v62 = vld [vmem:[%s793_s5] sm:$0xff] }
  0x38   :  { %311 = vmatpush.msrb.mxu3 %v281_v43  ;;  %344 = vmatpush.msra.mxu2 %v318_v61  ;;  %v374_v63 = vld [vmem:[%s792_s4] ss:$0 sm:$0xff] }
  0x39   :  { %231 = vmatpush.msrb.mxu0 %v102_v29  ;;  %251 = vmatpush.msrb.mxu1 %v118_v30  ;;  %v375_v3 = vld [vmem:[%s794_s6] ss:$0 sm:$0xff] }
  0x3a   :  { %345 = vmatpush.msra.mxu2 %v317_v62 }
  0x3b   :  { %232 = vmatpush.msrb.mxu0 %v101_v31  ;;  %252 = vmatpush.msrb.mxu1 %v117_v32 }
  0x3d   :  { %233 = vmatpush.msrb.mxu0 %v100_v33  ;;  %253 = vmatpush.msrb.mxu1 %v116_v34 }
  0x3f   :  { %234 = vmatpush.msrb.mxu0 %v99_v35  ;;  %254 = vmatpush.msrb.mxu1 %v115_v36 }
  0x41   :  { %235 = vmatpush.msrb.mxu0 %v98_v37  ;;  %255 = vmatpush.msrb.mxu1 %v114_v38 }
  0x42   :  { %236 = vmatmul.f32.vlgmr.msrb.gmra.mxu0 %v31_v39  ;;  %256 = vmatmul.f32.vlgmr.msrb.gmra.mxu1 %v32_v40 }
  0xab   :  { %v157_v46 = vpop.f32.mrf.mxu0 }
  0xac   :  { %v158_v47 = vadd.f32 %v373_v45, %v157_v46 }
  0xad   :  { %v177_v48 = vpop.f32.mrf.mxu1 }
  0xae   :  { %v178_v49 = vadd.f32 %v177_v48, %v158_v47 }
  0xaf   :  { %v197_v50 = vpop.f32.mrf.mxu2 }
  0xb0   :  { %v198_v51 = vadd.f32 %v197_v50, %v178_v49 }
  0xb3   :  { %v217_v52 = vpop.f32.mrf.mxu3 }
  0xb4   :  { %v218_v53 = vadd.f32 %v217_v52, %v198_v51 }
  0xb7   :  { %v277_v57 = vpop.f32.mrf.mxu2 }
  0xbf   :  { %v237_v54 = vpop.f32.mrf.mxu0  ;;  %v257_v55 = vpop.f32.mrf.mxu1 }
  0xc0   :  { %v238_v56 = vadd.f32 %v237_v54, %v218_v53 }
  0xc2   :  { %v258_v58 = vadd.f32 %v257_v55, %v238_v56 }
  0xc4   :  { %v278_v59 = vadd.f32 %v277_v57, %v258_v58 }
  0xc6   :  { %v280_v60 = vmax.f32 %v278_v59, 0.0 }
  0xc8   :  { %369 = vmatmul.msk.f32.vlgmr.msrb.gmra.mxu3 %vm288_vm2, %v280_v60 }
 0x14b   :  { %v313_v0 = vpop.f32.mrf.mxu3 }
 0x14c   :  { %v314_v1 = vadd.f32 %v374_v63, %v313_v0 }
 0x14e   :  { %v316_v2 = vmax.f32 %v314_v1, 0.0 }
 0x150   :  { %371 = vmatmul.msk.f32.vlgmr.msra.gmra.mxu2 %vm288_vm2, %v316_v2 }
 0x1d3   :  { %v347_v4 = vpop.f32.mrf.mxu2 }
 0x1d4   :  { %v348_v5 = vadd.f32 %v375_v3, %v347_v4 }
 0x1d6   :  { %350 = vst [vmem:[#allocation2] sm:$0xff] %v348_v5 }
 0x1d7   :  { %361 = dma.vmem_to_hbm [thread:$0]  %s357_s19, 128, %s359_s22, [#allocation3]  }
 0x1d8   :  { %400 = dma.done.wait [#allocation3], 128  }
 0x1d9   :  { %401 = vsyncadd [#allocation3], 4294967168 }
 0x1da   :  { %366 = vsyncpa [#allocation3], 1 }

</bundles_post_ra>
